<compile_context>
chip_gen: v5e
topology: v5e:2x2
jax: 0.10.0
libtpu: 0.0.40
codegen_flags: <defaults>
</compile_context>

<pallas_src>
import functools

import jax
import jax.numpy as jnp
from jax.experimental import pallas as pl
from jax.experimental.pallas import tpu as pltpu

BN_EPS = 1e-5


def _round_up(x, m):
    return (x + m - 1) // m * m


# ----------------------------------------------------------------------------
# Pallas kernels: tiled matmul (bf16 -> f32 acc) + per-channel shift (+ ReLU)
# ----------------------------------------------------------------------------
def _matmul_shift_kernel_single_k(a_ref, b_ref, shift_ref, o_ref, *, relu):
    """K fits one tile: no accumulator scratch needed."""
    y = jnp.dot(a_ref[...], b_ref[...], preferred_element_type=jnp.float32)
    y = y + shift_ref[...]
    if relu:
        y = jnp.maximum(y, 0.0)
    o_ref[...] = y.astype(o_ref.dtype)


def _matmul_shift_kernel_multi_k(a_ref, b_ref, shift_ref, o_ref, acc_ref, *, relu):
    k = pl.program_id(2)

    @pl.when(k == 0)
    def _():
        acc_ref[...] = jnp.zeros_like(acc_ref)

    acc_ref[...] += jnp.dot(
        a_ref[...], b_ref[...], preferred_element_type=jnp.float32
    )

    @pl.when(k == pl.num_programs(2) - 1)
    def _():
        y = acc_ref[...] + shift_ref[...]
        if relu:
            y = jnp.maximum(y, 0.0)
        o_ref[...] = y.astype(o_ref.dtype)


def fused_matmul_shift(a, b, shift, relu):
    """o = maybe_relu(a @ b + shift), shift broadcast over rows.

    a: (M, K) activations, b: (K, N) weights (BN scale already folded in),
    shift: (N,).  Operands are cast to bf16; accumulation is f32.
    """
    M, K = a.shape
    K2, N = b.shape
    assert K == K2

    # Adaptive tile sizes (keep (8, 128) alignment, avoid huge zero-padding).
    TM = min(512, _round_up(M, 8))
    TK = min(512, _round_up(K, 128))
    TN = min(256, _round_up(N, 128))
    Mp, Kp, Np = _round_up(M, TM), _round_up(K, TK), _round_up(N, TN)

    if (Mp, Kp) != (M, K):
        a = jnp.pad(a, ((0, Mp - M), (0, Kp - K)))
    if (Kp, Np) != (K, N):
        b = jnp.pad(b, ((0, Kp - K), (0, Np - N)))
    a = a.astype(jnp.bfloat16)
    b = b.astype(jnp.bfloat16)
    shift = jnp.pad(shift.reshape(1, N), ((0, 0), (0, Np - N))).astype(jnp.float32)

    nk = Kp // TK
    # Grid: (N tiles, M tiles, K tiles).  K innermost (accumulation); M innermost
    # of the parallel axes so the weight block index repeats -> B stays resident.
    grid = (Np // TN, Mp // TM, nk)

    if nk == 1:
        kernel = functools.partial(_matmul_shift_kernel_single_k, relu=relu)
        scratch_shapes = []
    else:
        kernel = functools.partial(_matmul_shift_kernel_multi_k, relu=relu)
        scratch_shapes = [pltpu.VMEM((TM, TN), jnp.float32)]

    out = pl.pallas_call(
        kernel,
        out_shape=jax.ShapeDtypeStruct((Mp, Np), jnp.float32),
        grid_spec=pltpu.PrefetchScalarGridSpec(
            num_scalar_prefetch=0,
            grid=grid,
            in_specs=[
                pl.BlockSpec((TM, TK), lambda j, i, k: (i, k)),   # activations
                pl.BlockSpec((TK, TN), lambda j, i, k: (k, j)),   # weights
                pl.BlockSpec((1, TN), lambda j, i, k: (0, j)),    # shift
            ],
            out_specs=pl.BlockSpec((TM, TN), lambda j, i, k: (i, j)),
            scratch_shapes=scratch_shapes,
        ),
        compiler_params=pltpu.CompilerParams(
            dimension_semantics=("parallel", "parallel", "arbitrary")
        ),
    )(a, b, shift)
    return out[:M, :N]


# ----------------------------------------------------------------------------
# Conv / pool glue around the Pallas matmul
# ----------------------------------------------------------------------------
def _im2col(x, KH, KW):
    """x: (N, H, W, Cin) -> (N*OH*OW, KH*KW*Cin), valid padding, stride 1."""
    N, H, W, Cin = x.shape
    OH, OW = H - KH + 1, W - KW + 1
    cols = [x[:, kh:kh + OH, kw:kw + OW, :] for kh in range(KH) for kw in range(KW)]
    patches = jnp.stack(cols, axis=3)                 # (N, OH, OW, KH*KW, Cin)
    return patches.reshape(N * OH * OW, KH * KW * Cin), OH, OW


def conv2d_bn_relu(x, w, bias, bn, relu=True):
    """Valid-padding stride-1 Conv2d + BatchNorm(eval) + ReLU, fused into one
    Pallas matmul call.  x: NHWC, w: (KH, KW, Cin, Cout)."""
    N = x.shape[0]
    KH, KW, Cin, Cout = w.shape
    A, OH, OW = _im2col(x, KH, KW)
    B = w.reshape(KH * KW * Cin, Cout)

    gamma, beta, mean, var = bn
    scale = gamma * jax.lax.rsqrt(var + BN_EPS)
    B = B * scale[None, :]                            # fold BN scale into weights
    shift = (bias - mean) * scale + beta              # fused bias + BN shift

    out = fused_matmul_shift(A, B, shift, relu=relu)
    return out.reshape(N, OH, OW, Cout)


def maxpool2(x):
    """MaxPool2d(kernel_size=2) on NHWC (floor mode, as PyTorch)."""
    N, H, W, C = x.shape
    H2, W2 = H // 2, W // 2
    x = x[:, : H2 * 2, : W2 * 2, :]
    return x.reshape(N, H2, 2, W2, 2, C).max(axis=(2, 4))


# ----------------------------------------------------------------------------
# Parameters (deterministic, PyTorch-default-style init) and forward pass
# ----------------------------------------------------------------------------
def init_conv(key, kh, kw, cin, cout):
    wkey, bkey = jax.random.split(key)
    fan_in = cin * kh * kw
    bound = 1.0 / (fan_in ** 0.5)   # kaiming_uniform(a=sqrt(5)) / default bias bound
    w = jax.random.uniform(wkey, (kh, kw, cin, cout), jnp.float32, -bound, bound)
    b = jax.random.uniform(bkey, (cout,), jnp.float32, -bound, bound)
    return {"w": w, "b": b}


def init_bn(c):
    # (gamma, beta, running_mean, running_var) at PyTorch init values.
    return (
        jnp.ones((c,), jnp.float32),
        jnp.zeros((c,), jnp.float32),
        jnp.zeros((c,), jnp.float32),
        jnp.ones((c,), jnp.float32),
    )


def init_down(key, cin, cout, ksize):
    k1, k2 = jax.random.split(key)
    return {
        "conv1": init_conv(k1, ksize, ksize, cin, cout),
        "bn1": init_bn(cout),
        "conv2": init_conv(k2, ksize, ksize, cout, cout),
        "bn2": init_bn(cout),
    }


def down_forward(p, x_nchw):
    """Down: MaxPool2d(2) -> (Conv -> BN -> ReLU) x 2.  Input/output NCHW."""
    x = jnp.transpose(x_nchw, (0, 2, 3, 1))           # NCHW -> NHWC
    x = maxpool2(x)
    x = conv2d_bn_relu(x, p["conv1"]["w"], p["conv1"]["b"], p["bn1"], relu=True)
    x = conv2d_bn_relu(x, p["conv2"]["w"], p["conv2"]["b"], p["bn2"], relu=True)
    return jnp.transpose(x, (0, 3, 1, 2))             # NHWC -> NCHW


# ----------------------------------------------------------------------------
# Pure-JAX f32 reference (same eval-mode BN fold) for numerical validation
# ----------------------------------------------------------------------------
def _ref_conv_bn_relu(x, w, bias, bn):
    y = jax.lax.conv_general_dilated(
        x, w, window_strides=(1, 1), padding="VALID",
        dimension_numbers=("NHWC", "HWIO", "NHWC"),
        precision=jax.lax.Precision.HIGHEST,
    )
    gamma, beta, mean, var = bn
    scale = gamma * jax.lax.rsqrt(var + BN_EPS)
    return jnp.maximum((y + bias - mean) * scale + beta, 0.0)


def down_ref(p, x_nchw):
    x = jnp.transpose(x_nchw, (0, 2, 3, 1))
    x = maxpool2(x)
    x = _ref_conv_bn_relu(x, p["conv1"]["w"], p["conv1"]["b"], p["bn1"])
    x = _ref_conv_bn_relu(x, p["conv2"]["w"], p["conv2"]["b"], p["bn2"])
    return jnp.transpose(x, (0, 3, 1, 2))


if __name__ == "__main__":
    key = jax.random.PRNGKey(0)
    pkey, xkey = jax.random.split(key)

    # Small shapes consistent with Down(in_channels=4, out_channels=8, kernel_size=3)
    N, Cin, H, W = 2, 4, 16, 16
    Cout, ksize = 8, 3
    params = init_down(pkey, Cin, Cout, ksize)
    x = jax.random.normal(xkey, (N, Cin, H, W), jnp.float32)   # NCHW, like PyTorch

    fwd = jax.jit(down_forward)
    out = fwd(params, x)
    jax.block_until_ready(out)

    # MaxPool 16->8, then two valid 3x3 convs: 8->6->4.
    assert out.shape == (N, Cout, 4, 4), out.shape
    assert bool(jnp.all(jnp.isfinite(out)))

    ref = down_ref(params, x)
    err = float(jnp.max(jnp.abs(out - ref)))
    # bf16 operands with f32 accumulation: comfortably within this tolerance.
    assert err < 5e-2, f"max abs error vs f32 reference too large: {err}"

    print("KERNEL_OK")
</pallas_src>

<mosaic_0001>
module attributes {stable_mosaic.version = 11 : i64} {
  func.func @_matmul_shift_kernel_single_k(%arg0: i32, %arg1: i32, %arg2: i32, %arg3: memref<72x128xbf16, #tpu.memory_space<vmem>>, %arg4: memref<128x128xbf16, #tpu.memory_space<vmem>>, %arg5: memref<1x128xf32, #tpu.memory_space<vmem>>, %arg6: memref<72x128xf32, #tpu.memory_space<vmem>>) attributes {dimension_semantics = [#tpu.dimension_semantics<parallel>, #tpu.dimension_semantics<parallel>, #tpu.dimension_semantics<arbitrary>], iteration_bounds = array<i64: 1, 1, 1>, scalar_prefetch = 0 : i64, scratch_operands = 0 : i64, tpu.core_type = #tpu.core_type<tc>, window_params = [{transform_indices = @transform_0, window_bounds = array<i64: 72, 128>}, {transform_indices = @transform_1, window_bounds = array<i64: 128, 128>}, {transform_indices = @transform_2, window_bounds = array<i64: 1, 128>}, {transform_indices = @transform_3, window_bounds = array<i64: 72, 128>}]} {
    %c0 = arith.constant 0 : index
    %c0_0 = arith.constant 0 : index
    %0 = vector.load %arg3[%c0, %c0_0] : memref<72x128xbf16, #tpu.memory_space<vmem>>, vector<72x128xbf16>
    %c0_1 = arith.constant 0 : index
    %c0_2 = arith.constant 0 : index
    %1 = vector.load %arg4[%c0_1, %c0_2] : memref<128x128xbf16, #tpu.memory_space<vmem>>, vector<128x128xbf16>
    %cst = arith.constant dense<0.000000e+00> : vector<72x128xf32>
    %2 = tpu.matmul %0, %1, %cst {dimension_numbers = #tpu.dot_dimension_numbers<[1], [0], [0], [1], [0, 0, 1, 1], [], []>} : vector<72x128xbf16>, vector<128x128xbf16>, vector<72x128xf32> -> vector<72x128xf32>
    %c0_3 = arith.constant 0 : index
    %c0_4 = arith.constant 0 : index
    %3 = vector.load %arg5[%c0_3, %c0_4] : memref<1x128xf32, #tpu.memory_space<vmem>>, vector<1x128xf32>
    %4 = vector.broadcast %3 : vector<1x128xf32> to vector<72x128xf32>
    %5 = arith.addf %2, %4 : vector<72x128xf32>
    %cst_5 = arith.constant 0.000000e+00 : f32
    %6 = vector.broadcast %cst_5 : f32 to vector<72x128xf32>
    %7 = arith.maximumf %5, %6 : vector<72x128xf32>
    %c0_6 = arith.constant 0 : index
    %c0_7 = arith.constant 0 : index
    %8 = vector.load %arg6[%c0_6, %c0_7] : memref<72x128xf32, #tpu.memory_space<vmem>>, vector<72x128xf32>
    tpu.vector_store %arg6[%c0_6, %c0_7], %7 {strides = array<i32>} : memref<72x128xf32, #tpu.memory_space<vmem>>, vector<72x128xf32>,
    return
  }
  func.func @transform_0(%arg0: i32, %arg1: i32, %arg2: i32) -> (i32, i32) {
    %c0_i32 = arith.constant 0 : i32
    return %arg1, %arg2 : i32, i32
  }
  func.func @transform_1(%arg0: i32, %arg1: i32, %arg2: i32) -> (i32, i32) {
    %c0_i32 = arith.constant 0 : i32
    return %arg2, %arg0 : i32, i32
  }
  func.func @transform_2(%arg0: i32, %arg1: i32, %arg2: i32) -> (i32, i32) {
    %c0_i32 = arith.constant 0 : i32
    %c0_i32_0 = arith.constant 0 : i32
    return %c0_i32, %arg0 : i32, i32
  }
  func.func @transform_3(%arg0: i32, %arg1: i32, %arg2: i32) -> (i32, i32) {
    %c0_i32 = arith.constant 0 : i32
    return %arg1, %arg0 : i32, i32
  }
}

module attributes {stable_mosaic.version = 11 : i64} {
  func.func @_matmul_shift_kernel_single_k(%arg0: i32, %arg1: i32, %arg2: i32, %arg3: memref<32x128xbf16, #tpu.memory_space<vmem>>, %arg4: memref<128x128xbf16, #tpu.memory_space<vmem>>, %arg5: memref<1x128xf32, #tpu.memory_space<vmem>>, %arg6: memref<32x128xf32, #tpu.memory_space<vmem>>) attributes {dimension_semantics = [#tpu.dimension_semantics<parallel>, #tpu.dimension_semantics<parallel>, #tpu.dimension_semantics<arbitrary>], iteration_bounds = array<i64: 1, 1, 1>, scalar_prefetch = 0 : i64, scratch_operands = 0 : i64, tpu.core_type = #tpu.core_type<tc>, window_params = [{transform_indices = @transform_0, window_bounds = array<i64: 32, 128>}, {transform_indices = @transform_1, window_bounds = array<i64: 128, 128>}, {transform_indices = @transform_2, window_bounds = array<i64: 1, 128>}, {transform_indices = @transform_3, window_bounds = array<i64: 32, 128>}]} {
    %c0 = arith.constant 0 : index
    %c0_0 = arith.constant 0 : index
    %0 = vector.load %arg3[%c0, %c0_0] : memref<32x128xbf16, #tpu.memory_space<vmem>>, vector<32x128xbf16>
    %c0_1 = arith.constant 0 : index
    %c0_2 = arith.constant 0 : index
    %1 = vector.load %arg4[%c0_1, %c0_2] : memref<128x128xbf16, #tpu.memory_space<vmem>>, vector<128x128xbf16>
    %cst = arith.constant dense<0.000000e+00> : vector<32x128xf32>
    %2 = tpu.matmul %0, %1, %cst {dimension_numbers = #tpu.dot_dimension_numbers<[1], [0], [0], [1], [0, 0, 1, 1], [], []>} : vector<32x128xbf16>, vector<128x128xbf16>, vector<32x128xf32> -> vector<32x128xf32>
    %c0_3 = arith.constant 0 : index
    %c0_4 = arith.constant 0 : index
    %3 = vector.load %arg5[%c0_3, %c0_4] : memref<1x128xf32, #tpu.memory_space<vmem>>, vector<1x128xf32>
    %4 = vector.broadcast %3 : vector<1x128xf32> to vector<32x128xf32>
    %5 = arith.addf %2, %4 : vector<32x128xf32>
    %cst_5 = arith.constant 0.000000e+00 : f32
    %6 = vector.broadcast %cst_5 : f32 to vector<32x128xf32>
    %7 = arith.maximumf %5, %6 : vector<32x128xf32>
    %c0_6 = arith.constant 0 : index
    %c0_7 = arith.constant 0 : index
    %8 = vector.load %arg6[%c0_6, %c0_7] : memref<32x128xf32, #tpu.memory_space<vmem>>, vector<32x128xf32>
    tpu.vector_store %arg6[%c0_6, %c0_7], %7 {strides = array<i32>} : memref<32x128xf32, #tpu.memory_space<vmem>>, vector<32x128xf32>,
    return
  }
  func.func @transform_0(%arg0: i32, %arg1: i32, %arg2: i32) -> (i32, i32) {
    %c0_i32 = arith.constant 0 : i32
    return %arg1, %arg2 : i32, i32
  }
  func.func @transform_1(%arg0: i32, %arg1: i32, %arg2: i32) -> (i32, i32) {
    %c0_i32 = arith.constant 0 : i32
    return %arg2, %arg0 : i32, i32
  }
  func.func @transform_2(%arg0: i32, %arg1: i32, %arg2: i32) -> (i32, i32) {
    %c0_i32 = arith.constant 0 : i32
    %c0_i32_0 = arith.constant 0 : i32
    return %c0_i32, %arg0 : i32, i32
  }
  func.func @transform_3(%arg0: i32, %arg1: i32, %arg2: i32) -> (i32, i32) {
    %c0_i32 = arith.constant 0 : i32
    return %arg1, %arg0 : i32, i32
  }
}

</mosaic_0001>

<bundles_post_ra>
// kernel: down_forward.2
= control target key start
LH: loop header
LB: loop body
LE: loop exit
PB: predicated region body
PF: predicated region fallthrough
CT: control target
= control target key end

     0   :  { %s348_s1 = inlined_call_operand.vmem [shape: bf16[128,128], index: 1, kind: input, shape index: {}]   ;;  %s349_s2 = inlined_call_operand.vmem [shape: f32[1,128], index: 2, kind: input, shape index: {}]   ;;  %s350_s0 = inlined_call_operand.vmem [shape: bf16[72,128], index: 0, kind: input, shape index: {}]   ;;  %s351_s3 = inlined_call_operand.vmem [shape: f32[72,128], index: 3, kind: output, shape index: {}]  }
   0x1   :  { %v233_v0 = vld [vmem:[%s348_s1 + $0x38] sm:$0xff]  ;;  %v232_v1 = vld [vmem:[%s348_s1 + $0x30] sm:$0xff]  ;;  %v231_v2 = vld [vmem:[%s348_s1 + $0x28] sm:$0xff] }
   0x2   :  { %236 = vmatpush.bf16.msra.mxu3 %v233_v0  ;;  %235 = vmatpush.bf16.msra.mxu2 %v233_v0  ;;  %v230_v3 = vld [vmem:[%s348_s1 + $0x20] sm:$0xff]  ;;  %v229_v4 = vld [vmem:[%s348_s1 + $0x18] sm:$0xff]  ;;  %v228_v5 = vld [vmem:[%s348_s1 + $0x10] sm:$0xff] }
   0x3   :  { %119 = vmatpush.bf16.msra.mxu0 %v233_v0  ;;  %234 = vmatpush.bf16.msra.mxu1 %v233_v0  ;;  %v227_v6 = vld [vmem:[%s348_s1 + $0x8] sm:$0xff]  ;;  %v226_v7 = vld [vmem:[%s348_s1] sm:$0xff]  ;;  %v225_v8 = vld [vmem:[%s350_s0 + $0x18] sm:$0xff] }
   0x4   :  { %v224_v9 = vld [vmem:[%s350_s0 + $0x10] sm:$0xff]  ;;  %v222_v10 = vld [vmem:[%s350_s0] sm:$0xff]  ;;  %v223_v11 = vld [vmem:[%s350_s0 + $0x8] sm:$0xff] }
   0x5   :  { %v22_v12 = vld [vmem:[%s350_s0 + $0x20] sm:$0xf] }
   0x6   :  { %239 = vmatpush.bf16.msra.mxu3 %v232_v1  ;;  %238 = vmatpush.bf16.msra.mxu2 %v232_v1  ;;  %v60_v13 = vunpack.c.l.b16 %v22_v12  ;;  %v258_v15 = vld [vmem:[%s349_s2] ss:$0 sm:$0xff] }
   0x7   :  { %120 = vmatpush.bf16.msra.mxu0 %v232_v1  ;;  %237 = vmatpush.bf16.msra.mxu1 %v232_v1 }
   0x8   :  { %v65_v14 = vpack.c.b16 %v60_v13, %v60_v13 }
   0xa   :  { %242 = vmatpush.bf16.msra.mxu3 %v231_v2  ;;  %241 = vmatpush.bf16.msra.mxu2 %v231_v2 }
   0xb   :  { %121 = vmatpush.bf16.msra.mxu0 %v231_v2  ;;  %240 = vmatpush.bf16.msra.mxu1 %v231_v2 }
   0xe   :  { %245 = vmatpush.bf16.msra.mxu3 %v230_v3  ;;  %244 = vmatpush.bf16.msra.mxu2 %v230_v3 }
   0xf   :  { %122 = vmatpush.bf16.msra.mxu0 %v230_v3  ;;  %243 = vmatpush.bf16.msra.mxu1 %v230_v3 }
  0x12   :  { %248 = vmatpush.bf16.msra.mxu3 %v229_v4  ;;  %247 = vmatpush.bf16.msra.mxu2 %v229_v4 }
  0x13   :  { %123 = vmatpush.bf16.msra.mxu0 %v229_v4  ;;  %246 = vmatpush.bf16.msra.mxu1 %v229_v4 }
  0x16   :  { %251 = vmatpush.bf16.msra.mxu3 %v228_v5  ;;  %250 = vmatpush.bf16.msra.mxu2 %v228_v5 }
  0x17   :  { %124 = vmatpush.bf16.msra.mxu0 %v228_v5  ;;  %249 = vmatpush.bf16.msra.mxu1 %v228_v5 }
  0x1a   :  { %254 = vmatpush.bf16.msra.mxu3 %v227_v6  ;;  %253 = vmatpush.bf16.msra.mxu2 %v227_v6 }
  0x1b   :  { %125 = vmatpush.bf16.msra.mxu0 %v227_v6  ;;  %252 = vmatpush.bf16.msra.mxu1 %v227_v6 }
  0x1e   :  { %257 = vmatpush.bf16.msra.mxu3 %v226_v7  ;;  %256 = vmatpush.bf16.msra.mxu2 %v226_v7 }
  0x1f   :  { %126 = vmatpush.bf16.msra.mxu0 %v226_v7  ;;  %255 = vmatpush.bf16.msra.mxu1 %v226_v7 }
  0x21   :  { %142 = vmatmul.bf16.vlgmr.msra.gmra.mxu3 %v225_v8  ;;  %137 = vmatmul.bf16.vlgmr.msra.gmra.mxu2 %v224_v9 }
  0x22   :  { %127 = vmatmul.bf16.vlgmr.msra.gmra.mxu0 %v222_v10  ;;  %132 = vmatmul.bf16.vlgmr.msra.gmra.mxu1 %v223_v11 }
  0x31   :  { %147 = vmatmul.bf16.gmra.mxu3 %v65_v14 }
  0x9f   :  { %v128_v16 = vpop.f32.mrf.mxu0  ;;  %v133_v17 = vpop.f32.mrf.mxu1 }
  0xa0   :  { %v129_v18 = vadd.f32 %v258_v15, %v128_v16  ;;  %v134_v19 = vadd.f32 %v258_v15, %v133_v17 }
  0xa2   :  { %v152_v20 = vmax.f32 %v129_v18, 0.0  ;;  %v154_v21 = vmax.f32 %v134_v19, 0.0 }
  0xa4   :  { %v143_v22 = vpop.f32.mrf.mxu3  ;;  %161 = vst [vmem:[%s351_s3] sm:$0xff] %v152_v20  ;;  %v138_v23 = vpop.f32.mrf.mxu2 }
  0xa5   :  { %v144_v24 = vadd.f32 %v258_v15, %v143_v22  ;;  %163 = vst [vmem:[%s351_s3 + $0x10] sm:$0xff] %v154_v21  ;;  %v139_v25 = vadd.f32 %v258_v15, %v138_v23 }
  0xa7   :  { %v158_v26 = vmax.f32 %v144_v24, 0.0  ;;  %v156_v27 = vmax.f32 %v139_v25, 0.0  ;;  %v130_v28 = vpop.f32.mrf.mxu0  ;;  %v135_v29 = vpop.f32.mrf.mxu1 }
  0xa8   :  { %v131_v30 = vadd.f32 %v258_v15, %v130_v28  ;;  %v136_v31 = vadd.f32 %v258_v15, %v135_v29 }
  0xa9   :  { %167 = vst [vmem:[%s351_s3 + $0x30] sm:$0xff] %v158_v26 }
  0xaa   :  { %165 = vst [vmem:[%s351_s3 + $0x20] sm:$0xff] %v156_v27  ;;  %v153_v32 = vmax.f32 %v131_v30, 0.0  ;;  %v155_v33 = vmax.f32 %v136_v31, 0.0 }
  0xac   :  { %v145_v34 = vpop.f32.mrf.mxu3  ;;  %162 = vst [vmem:[%s351_s3 + $0x8] sm:$0xff] %v153_v32  ;;  %v140_v35 = vpop.f32.mrf.mxu2 }
  0xad   :  { %v146_v36 = vadd.f32 %v258_v15, %v145_v34  ;;  %164 = vst [vmem:[%s351_s3 + $0x18] sm:$0xff] %v155_v33  ;;  %v141_v37 = vadd.f32 %v258_v15, %v140_v35 }
  0xaf   :  { %v159_v38 = vmax.f32 %v146_v36, 0.0  ;;  %v157_v39 = vmax.f32 %v141_v37, 0.0 }
  0xb1   :  { %168 = vst [vmem:[%s351_s3 + $0x38] sm:$0xff] %v159_v38 }
  0xb2   :  { %166 = vst [vmem:[%s351_s3 + $0x28] sm:$0xff] %v157_v39 }
  0xb4   :  { %v148_v40 = vpop.f32.mrf.mxu3 }
  0xb5   :  { %v149_v41 = vadd.f32 %v258_v15, %v148_v40 }
  0xb7   :  { %v160_v42 = vmax.f32 %v149_v41, 0.0 }
  0xb9   :  { %169 = vst [vmem:[%s351_s3 + $0x40] sm:$0xff] %v160_v42 }
  0xbc   :  { %v150_v43 = vpop.f32.mrf.mxu3 }

// kernel: down_forward.3
= control target key start
LH: loop header
LB: loop body
LE: loop exit
PB: predicated region body
PF: predicated region fallthrough
CT: control target
= control target key end

     0   :  { %s291_s0 = inlined_call_operand.vmem [shape: bf16[32,128], index: 0, kind: input, shape index: {}]   ;;  %s292_s1 = inlined_call_operand.vmem [shape: bf16[128,128], index: 1, kind: input, shape index: {}]   ;;  %s293_s2 = inlined_call_operand.vmem [shape: f32[1,128], index: 2, kind: input, shape index: {}]   ;;  %s294_s3 = inlined_call_operand.hbm [shape: f32[32,128], index: 3, kind: output, shape index: {}]  }
   0x1   :  { %v193_v0 = vld [vmem:[%s292_s1 + $0x38] sm:$0xff]  ;;  %v192_v1 = vld [vmem:[%s292_s1 + $0x30] sm:$0xff] }
   0x2   :  { %99 = vmatpush.bf16.msra.mxu0 %v193_v0  ;;  %194 = vmatpush.bf16.msra.mxu1 %v193_v0 }
   0x3   :  { %8 = vsyncpa [#allocation3], 0  ;;  %v191_v2 = vld [vmem:[%s292_s1 + $0x28] sm:$0xff]  ;;  %v190_v3 = vld [vmem:[%s292_s1 + $0x20] sm:$0xff]  ;;  %s132_s9 = sshll.u32 %s294_s3, 4  ;;  %s234_s10 = smov 8   ;;  %s133_s9 = int_to_ptr.hbm [resolvable:$true] %s132_s9 }
   0x4   :  { %v189_v4 = vld [vmem:[%s292_s1 + $0x18] sm:$0xff]  ;;  %v188_v5 = vld [vmem:[%s292_s1 + $0x10] sm:$0xff]  ;;  %v187_v6 = vld [vmem:[%s292_s1 + $0x8] sm:$0xff] }
   0x5   :  { %v186_v7 = vld [vmem:[%s292_s1] sm:$0xff]  ;;  %v185_v9 = vld [vmem:[%s291_s0 + $0x8] sm:$0xff]  ;;  %s232_s1 = smov [#allocation2]  }
   0x6   :  { %100 = vmatpush.bf16.msra.mxu0 %v192_v1  ;;  %195 = vmatpush.bf16.msra.mxu1 %v192_v1  ;;  %v184_v8 = vld [vmem:[%s291_s0] sm:$0xff]  ;;  %s130_s0 = sshll.u32 %s232_s1, 4  ;;  %s131_s0 = int_to_ptr.vmem [resolvable:$true] %s130_s0 }
   0x7   :  { %v205_v10 = vld [vmem:[%s293_s2] ss:$0 sm:$0xff]  ;;  %s233_s2 = smov 128  }
   0xa   :  { %101 = vmatpush.bf16.msra.mxu0 %v191_v2  ;;  %196 = vmatpush.bf16.msra.mxu1 %v191_v2 }
   0xe   :  { %102 = vmatpush.bf16.msra.mxu0 %v190_v3  ;;  %197 = vmatpush.bf16.msra.mxu1 %v190_v3 }
  0x12   :  { %103 = vmatpush.bf16.msra.mxu0 %v189_v4  ;;  %198 = vmatpush.bf16.msra.mxu1 %v189_v4 }
  0x16   :  { %104 = vmatpush.bf16.msra.mxu0 %v188_v5  ;;  %199 = vmatpush.bf16.msra.mxu1 %v188_v5 }
  0x1a   :  { %105 = vmatpush.bf16.msra.mxu0 %v187_v6  ;;  %200 = vmatpush.bf16.msra.mxu1 %v187_v6 }
  0x1e   :  { %106 = vmatpush.bf16.msra.mxu0 %v186_v7  ;;  %201 = vmatpush.bf16.msra.mxu1 %v186_v7 }
  0x21   :  { %107 = vmatmul.bf16.vlgmr.msra.gmra.mxu0 %v184_v8  ;;  %112 = vmatmul.bf16.vlgmr.msra.gmra.mxu1 %v185_v9 }
  0x9e   :  { %v108_v11 = vpop.f32.mrf.mxu0  ;;  %v113_v12 = vpop.f32.mrf.mxu1 }
  0x9f   :  { %v109_v13 = vadd.f32 %v205_v10, %v108_v11  ;;  %v114_v14 = vadd.f32 %v205_v10, %v113_v12 }
  0xa1   :  { %v118_v15 = vmax.f32 %v109_v13, 0.0  ;;  %v120_v16 = vmax.f32 %v114_v14, 0.0 }
  0xa3   :  { %122 = vst [vmem:[#allocation2] sm:$0xff] %v118_v15 }
  0xa4   :  { %124 = vst [vmem:[#allocation2 + $0x10] sm:$0xff] %v120_v16 }
  0xa6   :  { %v110_v17 = vpop.f32.mrf.mxu0  ;;  %v115_v18 = vpop.f32.mrf.mxu1 }
  0xa7   :  { %v111_v19 = vadd.f32 %v205_v10, %v110_v17  ;;  %v116_v20 = vadd.f32 %v205_v10, %v115_v18 }
  0xa9   :  { %v119_v21 = vmax.f32 %v111_v19, 0.0  ;;  %v121_v22 = vmax.f32 %v116_v20, 0.0 }
  0xab   :  { %123 = vst [vmem:[#allocation2 + $0x8] sm:$0xff] %v119_v21 }
  0xac   :  { %125 = vst [vmem:[#allocation2 + $0x18] sm:$0xff] %v121_v22 }
  0xad   :  { %138 = dma.vmem_to_hbm [thread:$0]  %s131_s0, 512, %s133_s9, [#allocation3], %s233_s2, %s233_s2, %s234_s10  }
  0xae   :  { %230 = dma.done.wait [#allocation3], 512  }
  0xaf   :  { %231 = vsyncadd [#allocation3], 4294966784 }
  0xb0   :  { %143 = vsyncpa [#allocation3], 1 }

</bundles_post_ra>
